<compile_context>
chip_gen: v6e
topology: v6e:2x2x1
jax: 0.10.0
libtpu: 0.0.40
codegen_flags: <defaults>
</compile_context>

<pallas_src>
import jax
import jax.numpy as jnp
from jax import lax
from jax.experimental import pallas as pl
from jax.experimental.pallas import tpu as pltpu

N = 64        # num nodes
D_IN = 32     # input_dim
D_OUT = 32    # out_dim
E = 256       # num edges
TEMP = 1.0    # gumbel-softmax temperature


def cognn_kernel(x_ref, at_ref, g_in_ref, g_out_ref, w_ref, b_ref, o_ref):
    """Fully fused CoGNN forward: two act GCNs + hard gumbel gating + env GCN."""
    x = x_ref[...]                      # (N, D_IN)        f32
    at = at_ref[...]                    # (N, N)           f32, AT[v,u] = #edges u->v
    w = w_ref[...]                      # (D_IN, 4+D_OUT)  [W_in^T | W_out^T | W_env^T]
    b = b_ref[...]                      # (1,    4+D_OUT)  [b_in   | b_out   | b_env  ]

    # One fused feature transform for all three GCNConvs (3 matmuls -> 1).
    xlin = jnp.dot(x, w, preferred_element_type=jnp.float32)       # (N, 4+D_OUT)
    z_act = xlin[:, 0:4]
    z_env = xlin[:, 4:]
    b_act = b[:, 0:4]
    b_env = b[:, 4:]

    # ---- act nets: shared gcn_norm, one 4-column aggregation ----
    # Self-loops folded algebraically: out = dis*(AT@(dis*z)) + dis^2*z + b.
    deg0 = jnp.sum(at, axis=1, keepdims=True) + 1.0                 # (N,1) in-deg + 1
    dis0 = lax.rsqrt(deg0)
    # Kept in f32: these logits drive a hard-argmax threshold, so bf16 rounding could
    # flip node masks; the 64x64x4 matmul is negligible anyway.
    agg_act = jnp.dot(at, dis0 * z_act, preferred_element_type=jnp.float32)
    logits = dis0 * agg_act + (dis0 * dis0) * z_act + b_act         # (N, 4)

    # F.gumbel_softmax(hard=True): forward value = one-hot(argmax((logits+g)/tau)).
    y_in = (logits[:, 0:2] + g_in_ref[...]) * (1.0 / TEMP)
    y_out = (logits[:, 2:4] + g_out_ref[...]) * (1.0 / TEMP)
    ki = (y_in[:, 0:1] >= y_in[:, 1:2]).astype(jnp.float32)         # keep_in  (N,1)
    ko = (y_out[:, 0:1] >= y_out[:, 1:2]).astype(jnp.float32)       # keep_out (N,1)

    # ---- env net on the filtered graph, without materializing it ----
    # AF^T = diag(ki) @ AT @ diag(ko);  filtered deg = ki*(AT@ko) + 1 (fresh self-loops).
    at_bf = at.astype(jnp.bfloat16)                                 # edge counts exact in bf16
    deg1 = ki * jnp.dot(at_bf, ko.astype(jnp.bfloat16),
                        preferred_element_type=jnp.float32) + 1.0   # (N,1), exact
    dis1 = lax.rsqrt(deg1)
    rhs = (ko * dis1 * z_env).astype(jnp.bfloat16)                  # bf16 MXU operands,
    agg_env = ki * jnp.dot(at_bf, rhs,                              # f32 accumulation
                           preferred_element_type=jnp.float32)
    o_ref[...] = dis1 * agg_env + (dis1 * dis1) * z_env + b_env     # (N, D_OUT)


def _vmem_spec():
    return pl.BlockSpec(memory_space=pltpu.MemorySpace.VMEM)


@jax.jit
def cognn_forward(x, at, params, gumbel_in, gumbel_out):
    # Concatenate the three tiny weight/bias tensors so the kernel does one xlin matmul.
    w_cat = jnp.concatenate(
        [params["w_in_t"], params["w_out_t"], params["w_env_t"]], axis=1)   # (D_IN, 4+D_OUT)
    b_cat = jnp.concatenate(
        [params["b_in"], params["b_out"], params["b_env"]], axis=1)         # (1,    4+D_OUT)
    # Single graph => no grid; the whole working set (<0.1 MiB) lives in VMEM.
    # TODO(synk): to occupy both v7x TensorCores, batch graphs on a leading
    #             "parallel" grid axis; pointless for one 64-node graph.
    return pl.pallas_call(
        cognn_kernel,
        out_shape=jax.ShapeDtypeStruct((N, D_OUT), jnp.float32),
        in_specs=[_vmem_spec() for _ in range(6)],
        out_specs=_vmem_spec(),
    )(x, at, gumbel_in, gumbel_out, w_cat, b_cat)


def _glorot(key, fan_out, fan_in):
    lim = jnp.sqrt(6.0 / (fan_in + fan_out))
    w = jax.random.uniform(key, (fan_out, fan_in), jnp.float32, -lim, lim)
    return w.T  # store W^T (in, out) for x @ W^T


def init_params(key):
    ks = jax.random.split(key, 6)
    return {
        "w_in_t": _glorot(ks[0], 2, D_IN),          # in_act_net GCNConv weight^T
        "b_in": jax.random.normal(ks[1], (1, 2), jnp.float32) * 0.1,
        "w_out_t": _glorot(ks[2], 2, D_IN),         # out_act_net GCNConv weight^T
        "b_out": jax.random.normal(ks[3], (1, 2), jnp.float32) * 0.1,
        "w_env_t": _glorot(ks[4], D_OUT, D_IN),     # env_net GCNConv weight^T
        "b_env": jax.random.normal(ks[5], (1, D_OUT), jnp.float32) * 0.1,
    }


if __name__ == "__main__":
    key = jax.random.PRNGKey(0)
    k_x, k_e, k_t, k_p, k_gi, k_go = jax.random.split(key, 6)

    x = jax.random.normal(k_x, (N, D_IN), jnp.float32)
    edge_index = jax.random.randint(k_e, (2, E), 0, N)          # (2, E) like PyG
    edge_type = jax.random.randint(k_t, (E,), 0, 2)             # unused on the GCN path
    params = init_params(k_p)
    gumbel_in = jax.random.gumbel(k_gi, (N, 2), jnp.float32)
    gumbel_out = jax.random.gumbel(k_go, (N, 2), jnp.float32)

    # Dense transposed adjacency: AT[v, u] = #edges u -> v (multi-edges counted,
    # exactly like PyG's scatter-add aggregation).
    src, dst = edge_index[0], edge_index[1]
    at = jnp.zeros((N, N), jnp.float32).at[dst, src].add(1.0)

    out = cognn_forward(x, at, params, gumbel_in, gumbel_out)
    jax.block_until_ready(out)

    # Pure-JAX f32 reference of the same dense math (sanity check).
    def ref_gcn(xv, atv, w_t, b):
        a = atv + jnp.eye(N, dtype=jnp.float32)
        dis = 1.0 / jnp.sqrt(jnp.sum(a, axis=1, keepdims=True))
        return dis * (a @ (dis * (xv @ w_t))) + b

    il = ref_gcn(x, at, params["w_in_t"], params["b_in"])
    ol = ref_gcn(x, at, params["w_out_t"], params["b_out"])
    yi = (il + gumbel_in) / TEMP
    yo = (ol + gumbel_out) / TEMP
    ki = (yi[:, 0:1] >= yi[:, 1:2]).astype(jnp.float32)
    ko = (yo[:, 0:1] >= yo[:, 1:2]).astype(jnp.float32)
    at_f = at * ki * ko.reshape(1, N)
    ref = ref_gcn(x, at_f, params["w_env_t"], params["b_env"])
    assert jnp.allclose(out, ref, atol=1e-2, rtol=1e-2), "mismatch vs reference"

    assert out.shape == (N, D_OUT)
    print("KERNEL_OK")
</pallas_src>

<mosaic_0001>
module attributes {stable_mosaic.version = 11 : i64} {
  func.func @cognn_kernel(%arg0: memref<64x32xf32, #tpu.memory_space<vmem>>, %arg1: memref<64x64xf32, #tpu.memory_space<vmem>>, %arg2: memref<64x2xf32, #tpu.memory_space<vmem>>, %arg3: memref<64x2xf32, #tpu.memory_space<vmem>>, %arg4: memref<32x36xf32, #tpu.memory_space<vmem>>, %arg5: memref<1x36xf32, #tpu.memory_space<vmem>>, %arg6: memref<64x32xf32, #tpu.memory_space<vmem>>) attributes {dimension_semantics = [], scalar_prefetch = 0 : i64, scratch_operands = 0 : i64, tpu.core_type = #tpu.core_type<tc>} {
    %c0 = arith.constant 0 : index
    %c0_0 = arith.constant 0 : index
    %0 = vector.load %arg0[%c0, %c0_0] : memref<64x32xf32, #tpu.memory_space<vmem>>, vector<64x32xf32>
    %c0_1 = arith.constant 0 : index
    %c0_2 = arith.constant 0 : index
    %1 = vector.load %arg1[%c0_1, %c0_2] : memref<64x64xf32, #tpu.memory_space<vmem>>, vector<64x64xf32>
    %c0_3 = arith.constant 0 : index
    %c0_4 = arith.constant 0 : index
    %2 = vector.load %arg4[%c0_3, %c0_4] : memref<32x36xf32, #tpu.memory_space<vmem>>, vector<32x36xf32>
    %c0_5 = arith.constant 0 : index
    %c0_6 = arith.constant 0 : index
    %3 = vector.load %arg5[%c0_5, %c0_6] : memref<1x36xf32, #tpu.memory_space<vmem>>, vector<1x36xf32>
    %cst = arith.constant dense<0.000000e+00> : vector<64x36xf32>
    %4 = tpu.matmul %0, %2, %cst {dimension_numbers = #tpu.dot_dimension_numbers<[1], [0], [0], [1], [0, 0, 1, 1], [], []>} : vector<64x32xf32>, vector<32x36xf32>, vector<64x36xf32> -> vector<64x36xf32>
    %5 = vector.extract_strided_slice %4 {offsets = [0, 0], sizes = [64, 4], strides = [1, 1]} : vector<64x36xf32> to vector<64x4xf32>
    %6 = vector.extract_strided_slice %4 {offsets = [0, 4], sizes = [64, 32], strides = [1, 1]} : vector<64x36xf32> to vector<64x32xf32>
    %7 = vector.extract_strided_slice %3 {offsets = [0, 0], sizes = [1, 4], strides = [1, 1]} : vector<1x36xf32> to vector<1x4xf32>
    %8 = vector.extract_strided_slice %3 {offsets = [0, 4], sizes = [1, 32], strides = [1, 1]} : vector<1x36xf32> to vector<1x32xf32>
    %cst_7 = arith.constant dense<0.000000e+00> : vector<64xf32>
    %9 = vector.multi_reduction <add>, %1, %cst_7 [1] : vector<64x64xf32> to vector<64xf32>
    %10 = vector.shape_cast %9 : vector<64xf32> to vector<64x1xf32>
    %cst_8 = arith.constant 1.000000e+00 : f32
    %11 = vector.broadcast %cst_8 : f32 to vector<64x1xf32>
    %12 = arith.addf %10, %11 : vector<64x1xf32>
    %13 = math.rsqrt %12 : vector<64x1xf32>
    %14 = vector.broadcast %13 : vector<64x1xf32> to vector<64x4xf32>
    %15 = arith.mulf %14, %5 : vector<64x4xf32>
    %cst_9 = arith.constant dense<0.000000e+00> : vector<64x4xf32>
    %16 = tpu.matmul %1, %15, %cst_9 {dimension_numbers = #tpu.dot_dimension_numbers<[1], [0], [0], [1], [0, 0, 1, 1], [], []>} : vector<64x64xf32>, vector<64x4xf32>, vector<64x4xf32> -> vector<64x4xf32>
    %17 = vector.broadcast %13 : vector<64x1xf32> to vector<64x4xf32>
    %18 = arith.mulf %17, %16 : vector<64x4xf32>
    %19 = arith.mulf %13, %13 : vector<64x1xf32>
    %20 = vector.broadcast %19 : vector<64x1xf32> to vector<64x4xf32>
    %21 = arith.mulf %20, %5 : vector<64x4xf32>
    %22 = arith.addf %18, %21 : vector<64x4xf32>
    %23 = vector.broadcast %7 : vector<1x4xf32> to vector<64x4xf32>
    %24 = arith.addf %22, %23 : vector<64x4xf32>
    %25 = vector.extract_strided_slice %24 {offsets = [0, 0], sizes = [64, 2], strides = [1, 1]} : vector<64x4xf32> to vector<64x2xf32>
    %c0_10 = arith.constant 0 : index
    %c0_11 = arith.constant 0 : index
    %26 = vector.load %arg2[%c0_10, %c0_11] : memref<64x2xf32, #tpu.memory_space<vmem>>, vector<64x2xf32>
    %27 = arith.addf %25, %26 : vector<64x2xf32>
    %cst_12 = arith.constant 1.000000e+00 : f32
    %28 = vector.broadcast %cst_12 : f32 to vector<64x2xf32>
    %29 = arith.mulf %27, %28 : vector<64x2xf32>
    %30 = vector.extract_strided_slice %24 {offsets = [0, 2], sizes = [64, 2], strides = [1, 1]} : vector<64x4xf32> to vector<64x2xf32>
    %c0_13 = arith.constant 0 : index
    %c0_14 = arith.constant 0 : index
    %31 = vector.load %arg3[%c0_13, %c0_14] : memref<64x2xf32, #tpu.memory_space<vmem>>, vector<64x2xf32>
    %32 = arith.addf %30, %31 : vector<64x2xf32>
    %cst_15 = arith.constant 1.000000e+00 : f32
    %33 = vector.broadcast %cst_15 : f32 to vector<64x2xf32>
    %34 = arith.mulf %32, %33 : vector<64x2xf32>
    %35 = vector.extract_strided_slice %29 {offsets = [0, 0], sizes = [64, 1], strides = [1, 1]} : vector<64x2xf32> to vector<64x1xf32>
    %36 = vector.extract_strided_slice %29 {offsets = [0, 1], sizes = [64, 1], strides = [1, 1]} : vector<64x2xf32> to vector<64x1xf32>
    %37 = arith.cmpf oge, %35, %36 : vector<64x1xf32>
    %38 = arith.extui %37 : vector<64x1xi1> to vector<64x1xi32>
    %39 = arith.sitofp %38 : vector<64x1xi32> to vector<64x1xf32>
    %40 = vector.extract_strided_slice %34 {offsets = [0, 0], sizes = [64, 1], strides = [1, 1]} : vector<64x2xf32> to vector<64x1xf32>
    %41 = vector.extract_strided_slice %34 {offsets = [0, 1], sizes = [64, 1], strides = [1, 1]} : vector<64x2xf32> to vector<64x1xf32>
    %42 = arith.cmpf oge, %40, %41 : vector<64x1xf32>
    %43 = arith.extui %42 : vector<64x1xi1> to vector<64x1xi32>
    %44 = arith.sitofp %43 : vector<64x1xi32> to vector<64x1xf32>
    %45 = arith.truncf %1 : vector<64x64xf32> to vector<64x64xbf16>
    %46 = arith.truncf %44 : vector<64x1xf32> to vector<64x1xbf16>
    %cst_16 = arith.constant dense<0.000000e+00> : vector<64x1xf32>
    %47 = tpu.matmul %45, %46, %cst_16 {dimension_numbers = #tpu.dot_dimension_numbers<[1], [0], [0], [1], [0, 0, 1, 1], [], []>} : vector<64x64xbf16>, vector<64x1xbf16>, vector<64x1xf32> -> vector<64x1xf32>
    %48 = arith.mulf %39, %47 : vector<64x1xf32>
    %cst_17 = arith.constant 1.000000e+00 : f32
    %49 = vector.broadcast %cst_17 : f32 to vector<64x1xf32>
    %50 = arith.addf %48, %49 : vector<64x1xf32>
    %51 = math.rsqrt %50 : vector<64x1xf32>
    %52 = arith.mulf %44, %51 : vector<64x1xf32>
    %53 = vector.broadcast %52 : vector<64x1xf32> to vector<64x32xf32>
    %54 = arith.mulf %53, %6 : vector<64x32xf32>
    %55 = arith.truncf %54 : vector<64x32xf32> to vector<64x32xbf16>
    %cst_18 = arith.constant dense<0.000000e+00> : vector<64x32xf32>
    %56 = tpu.matmul %45, %55, %cst_18 {dimension_numbers = #tpu.dot_dimension_numbers<[1], [0], [0], [1], [0, 0, 1, 1], [], []>} : vector<64x64xbf16>, vector<64x32xbf16>, vector<64x32xf32> -> vector<64x32xf32>
    %57 = vector.broadcast %39 : vector<64x1xf32> to vector<64x32xf32>
    %58 = arith.mulf %57, %56 : vector<64x32xf32>
    %59 = vector.broadcast %51 : vector<64x1xf32> to vector<64x32xf32>
    %60 = arith.mulf %59, %58 : vector<64x32xf32>
    %61 = arith.mulf %51, %51 : vector<64x1xf32>
    %62 = vector.broadcast %61 : vector<64x1xf32> to vector<64x32xf32>
    %63 = arith.mulf %62, %6 : vector<64x32xf32>
    %64 = arith.addf %60, %63 : vector<64x32xf32>
    %65 = vector.broadcast %8 : vector<1x32xf32> to vector<64x32xf32>
    %66 = arith.addf %64, %65 : vector<64x32xf32>
    %c0_19 = arith.constant 0 : index
    %c0_20 = arith.constant 0 : index
    %67 = vector.load %arg6[%c0_19, %c0_20] : memref<64x32xf32, #tpu.memory_space<vmem>>, vector<64x32xf32>
    tpu.vector_store %arg6[%c0_19, %c0_20], %66 {strides = array<i32>} : memref<64x32xf32, #tpu.memory_space<vmem>>, vector<64x32xf32>,
    return
  }
}

</mosaic_0001>

<bundles_post_ra>
// kernel: cognn_forward.1
= control target key start
LH: loop header
LB: loop body
LE: loop exit
PB: predicated region body
PF: predicated region fallthrough
CT: control target
= control target key end

     0   :  { %vm45_vm0 = vcmask 261120   ;;  %vm175_vm1 = vcmask 523264   ;;  %s1311_s27 = smov 126   ;;  %s1862_s4 = inlined_call_operand.vmem [shape: f32[32,36], index: 4, kind: input, shape index: {}]   ;;  %s1863_s0 = inlined_call_operand.vmem [shape: f32[64,32], index: 0, kind: input, shape index: {}]   ;;  %s1864_s1 = inlined_call_operand.vmem [shape: f32[64,64], index: 1, kind: input, shape index: {}]   ;;  %s1865_s3 = inlined_call_operand.vmem [shape: f32[64,2], index: 3, kind: input, shape index: {}]   ;;  %s1866_s5 = inlined_call_operand.vmem [shape: f32[1,36], index: 5, kind: input, shape index: {}]   ;;  %s1867_s2 = inlined_call_operand.vmem [shape: f32[64,2], index: 2, kind: input, shape index: {}]   ;;  %s1868_s6 = inlined_call_operand.vmem [shape: f32[64,32], index: 6, kind: output, shape index: {}]  }
   0x1   :  { %v43_v0 = vld [vmem:[%s1862_s4 + $0x18] sm:$0xff]  ;;  %v42_v1 = vld [vmem:[%s1862_s4 + $0x10] sm:$0xff]  ;;  %v24_v2 = vld [vmem:[%s1863_s0] sm:$0xff] }
   0x2   :  { %1165 = vmatprep.subr.mxu0 %v43_v0  ;;  %v41_v3 = vld [vmem:[%s1862_s4 + $0x8] sm:$0xff]  ;;  %1173 = vmatprep.mubr.msk.f32.mxu0 %vm45_vm0, %v24_v2  ;;  %v40_v4 = vld [vmem:[%s1862_s4] sm:$0xff]  ;;  %v1369_v5 = vld [vmem:[%s1864_s1 + $0x38] sm:$0xff]  ;;  %s1308_s4 = smov 2  }
   0x3   :  { %1166 = vmatpush3.msra.mxu0 %v43_v0  ;;  %v1374_v6 = vld [vmem:[%s1864_s1 + $0x28] sm:$0xff]  ;;  %v1379_v7 = vld [vmem:[%s1864_s1 + $0x30] sm:$0xff]  ;;  %v197_v8 = vsel %vm175_vm1, %v1369_v5, 0.0  ;;  %v1388_v10 = vld [vmem:[%s1864_s1 + $0x20] sm:$0xff] }
   0x4   :  { %1167 = vmatprep.subr.mxu0 %v42_v1  ;;  %v191_v9 = vsel %vm175_vm1, %v1374_v6, 0.0  ;;  %v25_v11 = vld [vmem:[%s1863_s0 + $0x8] sm:$0xff]  ;;  %198 = vadd.xlane.f32.xlu0 %v197_v8  ;;  %v26_v12 = vld [vmem:[%s1863_s0 + $0x10] sm:$0xff]  ;;  %v194_v13 = vsel %vm175_vm1, %v1379_v7, 0.0  ;;  %v32_v14 = vld [vmem:[%s1864_s1] sm:$0xff]  ;;  %v188_v15 = vsel %vm175_vm1, %v1388_v10, 0.0 }
   0x5   :  { %1168 = vmatpush3.msra.mxu0 %v42_v1  ;;  %192 = vadd.xlane.f32.xlu1 %v191_v9  ;;  %v1406_v16 = vld [vmem:[%s1864_s1 + $0x18] sm:$0xff]  ;;  %v1413_v17 = vld [vmem:[%s1864_s1 + $0x10] sm:$0xff]  ;;  %v28_v19 = vld [vmem:[%s1863_s0 + $0x20] sm:$0xff]  ;;  %v176_v26 = vsel %vm175_vm1, %v32_v14, 0.0 }
   0x6   :  { %1169 = vmatprep.subr.mxu0 %v41_v3  ;;  %1201 = vmatprep.mubr.msk.f32.mxu1 %vm175_vm1, %v32_v14  ;;  %v27_v18 = vld [vmem:[%s1863_s0 + $0x18] sm:$0xff]  ;;  %v185_v20 = vsel %vm175_vm1, %v1406_v16, 0.0  ;;  %v182_v21 = vsel %vm175_vm1, %v1413_v17, 0.0  ;;  %v1429_v22 = vld [vmem:[%s1864_s1 + $0x8] sm:$0xff]  ;;  %v30_v24 = vld [vmem:[%s1863_s0 + $0x30] sm:$0xff] }
   0x7   :  { %1170 = vmatpush3.msra.mxu0 %v41_v3  ;;  %v29_v23 = vld [vmem:[%s1863_s0 + $0x28] sm:$0xff]  ;;  %v179_v25 = vsel %vm175_vm1, %v1429_v22, 0.0  ;;  %v31_v27 = vld [vmem:[%s1863_s0 + $0x38] sm:$0xff]  ;;  %v1448_v28 = vpack.c.bf16 %v1429_v22, %v32_v14  ;;  %v421_v30 = vld [vmem:[%s1865_s3 + $0x30] sm:$0xff] }
   0x8   :  { %1171 = vmatprep.subr.mxu0 %v40_v4  ;;  %195 = vadd.xlane.f32.xlu0 %v194_v13  ;;  %v422_v29 = vld [vmem:[%s1865_s3 + $0x38] sm:$0xff]  ;;  %v419_v31 = vld [vmem:[%s1865_s3 + $0x20] sm:$0xff]  ;;  %v417_v32 = vld [vmem:[%s1865_s3 + $0x10] sm:$0xff] }
   0x9   :  { %1172 = vmatpush3.msra.mxu0 %v40_v4  ;;  %189 = vadd.xlane.f32.xlu1 %v188_v15  ;;  %v420_v33 = vld [vmem:[%s1865_s3 + $0x28] sm:$0xff]  ;;  %v415_v34 = vld [vmem:[%s1865_s3] sm:$0xff]  ;;  %v418_v35 = vld [vmem:[%s1865_s3 + $0x18] sm:$0xff] }
   0xa   :  { %1174 = vmatmul.mubr.msk.f32.vlgmr.msra.gmra.mxu0 %vm45_vm0, %v25_v11  ;;  %v416_v36 = vld [vmem:[%s1865_s3 + $0x8] sm:$0xff] }
   0xb   :  { %1176 = vmatprep.mubr.msk.f32.mxu0 %vm45_vm0, %v26_v12 }
   0xc   :  { %186 = vadd.xlane.f32.xlu0 %v185_v20 }
   0xd   :  { %183 = vadd.xlane.f32.xlu1 %v182_v21 }
   0xe   :  { %1177 = vmatmul.mubr.msk.f32.gmra.mxu0 %vm45_vm0, %v27_v18 }
   0xf   :  { %1179 = vmatprep.mubr.msk.f32.mxu0 %vm45_vm0, %v28_v19 }
  0x10   :  { %180 = vadd.xlane.f32.xlu0 %v179_v25 }
  0x11   :  { %177 = vadd.xlane.f32.xlu1 %v176_v26 }
  0x12   :  { %1180 = vmatmul.mubr.msk.f32.gmra.mxu0 %vm45_vm0, %v29_v23 }
  0x13   :  { %1182 = vmatprep.mubr.msk.f32.mxu0 %vm45_vm0, %v30_v24 }
  0x16   :  { %1183 = vmatmul.mubr.msk.f32.gmra.mxu0 %vm45_vm0, %v31_v27 }
  0x17   :  { %1221 = vmatprep.mubr.msk.bf16.mxu0 %vm175_vm1, %v1448_v28 }
  0x22   :  { %445 = vrot.lane.b32.xlu1 %v422_v29, %s1308_s4 }
  0x26   :  { %443 = vrot.lane.b32.xlu0 %v421_v30, %s1308_s4  ;;  %439 = vrot.lane.b32.xlu1 %v419_v31, %s1308_s4 }
  0x2a   :  { %435 = vrot.lane.b32.xlu0 %v417_v32, %s1308_s4  ;;  %441 = vrot.lane.b32.xlu1 %v420_v33, %s1308_s4 }
  0x2e   :  { %431 = vrot.lane.b32.xlu0 %v415_v34, %s1308_s4  ;;  %437 = vrot.lane.b32.xlu1 %v418_v35, %s1308_s4 }
  0x32   :  { %433 = vrot.lane.b32.xlu1 %v416_v36, %s1308_s4 }
  0x8d   :  { %v199_v37 = vpop.xlane.xlu0 %198 }
  0x8e   :  { %v193_v38 = vpop.xlane.xlu1 %192  ;;  %v207_v41 = vadd.f32 1.0, %v199_v37 }
  0x8f   :  { %v205_v44 = vadd.f32 1.0, %v193_v38 }
  0x90   :  { %1276 = vrsqrt.f32 %v207_v41 }
  0x91   :  { %v196_v39 = vpop.xlane.xlu0 %195 }
  0x92   :  { %v190_v40 = vpop.xlane.xlu1 %189  ;;  %v206_v42 = vadd.f32 1.0, %v196_v39 }
  0x93   :  { %v204_v47 = vadd.f32 1.0, %v190_v40 }
  0x94   :  { %1278 = vrsqrt.f32 %v206_v42 }
  0x95   :  { %v187_v43 = vpop.xlane.xlu0 %186  ;;  %1280 = vrsqrt.f32 %v205_v44 }
  0x96   :  { %v184_v45 = vpop.xlane.xlu1 %183  ;;  %v203_v49 = vadd.f32 1.0, %v187_v43  ;;  %1282 = vrsqrt.f32 %v204_v47 }
  0x97   :  { %v202_v52 = vadd.f32 1.0, %v184_v45 }
  0x98   :  { %1284 = vrsqrt.f32 %v203_v49 }
  0x99   :  { %v181_v50 = vpop.xlane.xlu0 %180  ;;  %1286 = vrsqrt.f32 %v202_v52 }
  0x9a   :  { %v178_v53 = vpop.xlane.xlu1 %177  ;;  %v201_v55 = vadd.f32 1.0, %v181_v50  ;;  %v1538_v50 = vld [vmem:[%s1866_s5] ss:$0 sm:$0xff]  ;;  %s1309_s5 = smov 127  }
  0x9b   :  { %v200_v57 = vadd.f32 1.0, %v178_v53 }
  0x9c   :  { %1288 = vrsqrt.f32 %v201_v55 }
  0x9d   :  { %v1277_v59 = vpop.eup %1276  ;;  %1290 = vrsqrt.f32 %v200_v57 }
  0x9e   :  { %v446_v21 = vpop.permute.xlu1 %445  ;;  %v368_v26 = vmul.f32 %v1277_v59, %v1277_v59 }
  0xa1   :  { %v1500_v62 = vpop.eup %1278 }
  0xa2   :  { %v1281_v1 = vpop.eup %1280  ;;  %v440_v27 = vpop.permute.xlu1 %439  ;;  %v367_v31 = vmul.f32 %v1500_v62, %v1500_v62 }
  0xa3   :  { %v1283_v3 = vpop.eup %1282  ;;  %v366_v25 = vmul.f32 %v1281_v1, %v1281_v1 }
  0xa4   :  { %v365_v30 = vmul.f32 %v1283_v3, %v1283_v3 }
  0xa5   :  { %v1285_v8 = vpop.eup %1284 }
  0xa6   :  { %v1287_v11 = vpop.eup %1286  ;;  %v364_v33 = vmul.f32 %v1285_v8, %v1285_v8  ;;  %v442_v47 = vpop.permute.xlu1 %441 }
  0xa7   :  { %v363_v38 = vmul.f32 %v1287_v11, %v1287_v11 }
  0xa9   :  { %v1289_v13 = vpop.eup %1288 }
  0xaa   :  { %v1291_v15 = vpop.eup %1290  ;;  %v362_v49 = vmul.f32 %v1289_v13, %v1289_v13 }
  0xca   :  { %v1485_v46 = vpop.f32.mrf.mxu0 }
  0xcb   :  { %v217_v14 = vmul.f32 %v1289_v13, %v1485_v46 }
  0xcc   :  { %v1487_v48 = vpop.f32.mrf.mxu0 }
  0xcd   :  { %v216_v18 = vmul.f32 %v1291_v15, %v1487_v48 }
  0xce   :  { %v1489_v51 = vpop.f32.mrf.mxu0 }
  0xcf   :  { %v219_v9 = vmul.f32 %v1285_v8, %v1489_v51  ;;  %v372_v52 = vmul.f32 %v1489_v51, %v364_v33 }
  0xd0   :  { %v1491_v54 = vpop.f32.mrf.mxu0 }
  0xd1   :  { %v218_v12 = vmul.f32 %v1287_v11, %v1491_v54 }
  0xd2   :  { %v1493_v56 = vpop.f32.mrf.mxu0 }
  0xd3   :  { %v221_v2 = vmul.f32 %v1281_v1, %v1493_v56  ;;  %v374_v35 = vmul.f32 %v1493_v56, %v366_v25 }
  0xd4   :  { %v1495_v58 = vpop.f32.mrf.mxu0 }
  0xd5   :  { %v220_v4 = vmul.f32 %v1283_v3, %v1495_v58  ;;  %v373_v39 = vmul.f32 %v365_v30, %v1495_v58 }
  0xd6   :  { %v1497_v60 = vpop.f32.mrf.mxu0 }
  0xd7   :  { %v223_v61 = vmul.f32 %v1277_v59, %v1497_v60  ;;  %v376_v37 = vmul.f32 %v1497_v60, %v368_v26 }
  0xd8   :  { %v1502_v63 = vpop.f32.mrf.mxu0 }
  0xd9   :  { %1185 = vmatprep.subr.mxu1 %v223_v61  ;;  %v222_v0 = vmul.f32 %v1500_v62, %v1502_v63  ;;  %v375_v41 = vmul.f32 %v367_v31, %v1502_v63 }
  0xda   :  { %1186 = vmatpush3.msra.mxu1 %v223_v61  ;;  %v444_v61 = vpop.permute.xlu0 %443 }
  0xdb   :  { %1187 = vmatprep.subr.mxu1 %v222_v0 }
  0xdc   :  { %1188 = vmatpush3.msra.mxu1 %v222_v0 }
  0xdd   :  { %1189 = vmatprep.subr.mxu1 %v221_v2 }
  0xde   :  { %1190 = vmatpush3.msra.mxu1 %v221_v2 }
  0xdf   :  { %1191 = vmatprep.subr.mxu1 %v220_v4 }
  0xe0   :  { %1192 = vmatpush3.msra.mxu1 %v220_v4 }
  0xe1   :  { %1193 = vmatprep.subr.mxu1 %v219_v9 }
  0xe2   :  { %1194 = vmatpush3.msra.mxu1 %v219_v9  ;;  %v370_v9 = vmul.f32 %v1485_v46, %v362_v49 }
  0xe3   :  { %1195 = vmatprep.subr.mxu1 %v218_v12 }
  0xe4   :  { %1196 = vmatpush3.msra.mxu1 %v218_v12 }
  0xe5   :  { %1197 = vmatprep.subr.mxu1 %v217_v14 }
  0xe6   :  { %1198 = vmatpush3.msra.mxu1 %v217_v14 }
  0xe7   :  { %1199 = vmatprep.subr.mxu1 %v216_v18 }
  0xe8   :  { %1200 = vmatpush3.msra.mxu1 %v216_v18  ;;  %v438_v18 = vpop.permute.xlu1 %437 }
  0xe9   :  { %1202 = vmatmul.mubr.msk.f32.vlgmr.msra.gmra.mxu1 %vm175_vm1, %v1429_v22 }
  0xea   :  { %1204 = vmatprep.mubr.msk.f32.mxu1 %vm175_vm1, %v1413_v17 }
  0xec   :  { %v434_v30 = vpop.permute.xlu1 %433 }
  0xed   :  { %1205 = vmatmul.mubr.msk.f32.gmra.mxu1 %vm175_vm1, %v1406_v16 }
  0xee   :  { %1207 = vmatprep.mubr.msk.f32.mxu1 %vm175_vm1, %v1388_v10 }
  0xf1   :  { %1208 = vmatmul.mubr.msk.f32.gmra.mxu1 %vm175_vm1, %v1374_v6 }
  0xf2   :  { %1210 = vmatprep.mubr.msk.f32.mxu1 %vm175_vm1, %v1379_v7 }
  0xf5   :  { %1211 = vmatmul.mubr.msk.f32.gmra.mxu1 %vm175_vm1, %v1369_v5 }
  0xf6   :  { %1237 = vmatprep.mubr.msk.bf16.mxu1 %vm175_vm1, %v1448_v28 }
 0x1a9   :  { %v1203_v19 = vpop.f32.mrf.mxu1 }
 0x1aa   :  { %v354_v0 = vmul.f32 %v1289_v13, %v1203_v19 }
 0x1ab   :  { %v314_v20 = vpop.f32.mrf.mxu1 }
 0x1ac   :  { %v378_v19 = vadd.f32 %v370_v9, %v354_v0  ;;  %v403_v9 = vld [vmem:[%s1867_s2 + $0x20] sm:$0xff] }
 0x1ad   :  { %v1206_v22 = vpop.f32.mrf.mxu1 }
 0x1ae   :  { %v356_v42 = vmul.f32 %v1285_v8, %v1206_v22  ;;  %v1570_v26 = vadd.f32 %v1538_v50, %v378_v19  ;;  %v399_v19 = vld [vmem:[%s1867_s2] sm:$0xff] }
 0x1af   :  { %v324_v23 = vpop.f32.mrf.mxu1 }
 0x1b0   :  { %v355_v53 = vmul.f32 %v1287_v11, %v324_v23  ;;  %v380_v2 = vadd.f32 %v372_v52, %v356_v42  ;;  %v353_v11 = vmul.f32 %v1291_v15, %v314_v20  ;;  %v436_v20 = vpop.permute.xlu0 %435 }
 0x1b1   :  { %v1209_v24 = vpop.f32.mrf.mxu1 }
 0x1b2   :  { %v358_v32 = vmul.f32 %v1281_v1, %v1209_v24  ;;  %v361_v1 = vmul.f32 %v1291_v15, %v1291_v15  ;;  %v1560_v23 = vadd.f32 %v1538_v50, %v380_v2 }
 0x1b3   :  { %v334_v29 = vpop.f32.mrf.mxu1 }
 0x1b4   :  { %v357_v28 = vmul.f32 %v1283_v3, %v334_v29  ;;  %v382_v43 = vadd.f32 %v374_v35, %v358_v32  ;;  %v369_v22 = vmul.f32 %v361_v1, %v1487_v48  ;;  %v458_v29 = vadd.f32 %v438_v18, %v1560_v23  ;;  %v432_v33 = vpop.permute.xlu0 %431 }
 0x1b5   :  { %v1212_v34 = vpop.f32.mrf.mxu1 }
 0x1b6   :  { %v360_v36 = vmul.f32 %v1277_v59, %v1212_v34  ;;  %v381_v55 = vadd.f32 %v373_v39, %v357_v28  ;;  %v1546_v3 = vadd.f32 %v1538_v50, %v382_v43  ;;  %v456_v34 = vadd.f32 %v434_v30, %v1570_v26 }
 0x1b7   :  { %v344_v40 = vpop.f32.mrf.mxu1  ;;  %v1678_v30 = vpack.c.bf16 %v1369_v5, %v1379_v7 }
 0x1b8   :  { %v384_v44 = vadd.f32 %v376_v37, %v360_v36  ;;  %v359_v45 = vmul.f32 %v1500_v62, %v344_v40  ;;  %v371_v62 = vmul.f32 %v363_v38, %v1491_v54  ;;  %v1554_v14 = vadd.f32 %v1538_v50, %v381_v55 }
 0x1b9   :  { %v460_v15 = vadd.f32 %v442_v47, %v1546_v3  ;;  %v1310_v36 = vmov 0.0  }
 0x1ba   :  { %v1542_v57 = vadd.f32 %v1538_v50, %v384_v44  ;;  %v383_v59 = vadd.f32 %v375_v41, %v359_v45  ;;  %v379_v12 = vadd.f32 %v371_v62, %v355_v53  ;;  %v459_v25 = vadd.f32 %v440_v27, %v1554_v14 }
 0x1bc   :  { %v1549_v4 = vadd.f32 %v1538_v50, %v383_v59  ;;  %v462_v8 = vadd.f32 %v446_v21, %v1542_v57  ;;  %v377_v21 = vadd.f32 %v369_v22, %v353_v11  ;;  %v1565_v24 = vadd.f32 %v1538_v50, %v379_v12 }
 0x1bd   :  { %v411_v12 = vadd.f32 %v403_v9, %v1554_v14  ;;  %v402_v14 = vld [vmem:[%s1867_s2 + $0x18] sm:$0xff] }
 0x1be   :  { %541 = vrot.lane.b32.xlu1 %v462_v8, %s1309_s5  ;;  %v461_v13 = vadd.f32 %v444_v61, %v1549_v4  ;;  %v391_v31 = vadd.f32 %v1538_v50, %v377_v21  ;;  %v457_v32 = vadd.f32 %v436_v20, %v1565_v24  ;;  %v405_v61 = vld [vmem:[%s1867_s2 + $0x30] sm:$0xff]  ;;  %v1651_v22 = vadd.f32 %v402_v14, %v1560_v23 }
 0x1bf   :  { %v413_v2 = vadd.f32 %v405_v61, %v1549_v4  ;;  %v404_v4 = vld [vmem:[%s1867_s2 + $0x28] sm:$0xff] }
 0x1c0   :  { %539 = vrot.lane.b32.xlu0 %v461_v13, %s1309_s5  ;;  %v455_v27 = vadd.f32 %v432_v33, %v391_v31  ;;  %v1638_v18 = vadd.f32 %v404_v4, %v1546_v3  ;;  %v407_v3 = vadd.f32 %v399_v19, %v391_v31 }
 0x1c2   :  { %537 = vrot.lane.b32.xlu1 %v460_v15, %s1309_s5 }
 0x1c4   :  { %535 = vrot.lane.b32.xlu0 %v459_v25, %s1309_s5 }
 0x1c6   :  { %533 = vrot.lane.b32.xlu1 %v458_v29, %s1309_s5 }
 0x1c8   :  { %531 = vrot.lane.b32.xlu0 %v457_v32, %s1309_s5 }
 0x1ca   :  { %529 = vrot.lane.b32.xlu1 %v456_v34, %s1309_s5 }
 0x1cc   :  { %527 = vrot.lane.b32.xlu0 %v455_v27, %s1309_s5 }
 0x230   :  { %v542_v35 = vpop.permute.xlu1 %541 }
 0x231   :  { %vm558_vm2 = vcmp.ge.f32.partialorder %v462_v8, %v542_v35  ;;  %v406_v8 = vld [vmem:[%s1867_s2 + $0x38] sm:$0xff] }
 0x232   :  { %v540_v28 = vpop.permute.xlu0 %539  ;;  %v1582_v37 = vsel %vm558_vm2, 1.0, %v1310_v36  ;;  %v1625_v11 = vadd.f32 %v406_v8, %v1542_v57 }
 0x233   :  { %vm557_vm3 = vcmp.ge.f32.partialorder %v461_v13, %v540_v28  ;;  %v401_v13 = vld [vmem:[%s1867_s2 + $0x10] sm:$0xff] }
 0x234   :  { %v1585_v38 = vsel %vm557_vm3, 1.0, %v1310_v36  ;;  %v538_v39 = vpop.permute.xlu1 %537  ;;  %v409_v57 = vadd.f32 %v401_v13, %v1565_v24  ;;  %v1312_v13 = vmov 2  }
 0x235   :  { %v582_v40 = vpack.c.bf16 %v1582_v37, %v1585_v38  ;;  %vm556_vm4 = vcmp.ge.f32.partialorder %v460_v15, %v538_v39  ;;  %v400_v15 = vld [vmem:[%s1867_s2 + $0x8] sm:$0xff]  ;;  %1252 = vset.pattern.permute.xlu0 %v1312_v13  ;;  %1253 = vset.pattern.permute.xlu1 %v1312_v13  ;;  %s1314_s2 = smov 124  }
 0x236   :  { %v536_v41 = vpop.permute.xlu0 %535  ;;  %v1590_v42 = vsel %vm556_vm4, 1.0, %v1310_v36  ;;  %v1660_v20 = vadd.f32 %v400_v15, %v1570_v26  ;;  %v1670_v26 = vpack.c.bf16 %v1374_v6, %v1388_v10 }
 0x237   :  { %vm555_vm5 = vcmp.ge.f32.partialorder %v459_v25, %v536_v41  ;;  %593 = vrot.lane.b32.xlu0 %v582_v40, %s1311_s27 }
 0x238   :  { %v1593_v43 = vsel %vm555_vm5, 1.0, %v1310_v36  ;;  %v534_v44 = vpop.permute.xlu1 %533 }
 0x239   :  { %v581_v45 = vpack.c.bf16 %v1590_v42, %v1593_v43  ;;  %vm554_vm6 = vcmp.ge.f32.partialorder %v458_v29, %v534_v44  ;;  %v1666_v29 = vpack.c.bf16 %v1406_v16, %v1413_v17 }
 0x23a   :  { %v532_v47 = vpop.permute.xlu0 %531  ;;  %v1598_v49 = vsel %vm554_vm6, 1.0, %v1310_v36 }
 0x23b   :  { %vm553_vm7 = vcmp.ge.f32.partialorder %v457_v32, %v532_v47  ;;  %591 = vrot.lane.b32.xlu1 %v581_v45, %s1311_s27 }
 0x23c   :  { %v1601_v52 = vsel %vm553_vm7, 1.0, %v1310_v36  ;;  %v530_v53 = vpop.permute.xlu1 %529 }
 0x23d   :  { %v580_v55 = vpack.c.bf16 %v1598_v49, %v1601_v52  ;;  %vm552_vm8 = vcmp.ge.f32.partialorder %v456_v34, %v530_v53 }
 0x23e   :  { %v528_v59 = vpop.permute.xlu0 %527  ;;  %v1609_v0 = vsel %vm552_vm8, 1.0, %v1310_v36 }
 0x23f   :  { %vm551_vm9 = vcmp.ge.f32.partialorder %v455_v27, %v528_v59  ;;  %589 = vrot.lane.b32.xlu0 %v580_v55, %s1311_s27 }
 0x240   :  { %v1612_v1 = vsel %vm551_vm9, 1.0, %v1310_v36 }
 0x241   :  { %v579_v62 = vpack.c.bf16 %v1609_v0, %v1612_v1 }
 0x243   :  { %587 = vrot.lane.b32.xlu1 %v579_v62, %s1311_s27  ;;  %483 = vrot.lane.b32.xlu0 %v413_v2, %s1309_s5 }
 0x247   :  { %485 = vrot.lane.b32.xlu1 %v1625_v11, %s1309_s5  ;;  %479 = vrot.lane.b32.xlu0 %v411_v12, %s1309_s5 }
 0x24b   :  { %481 = vrot.lane.b32.xlu1 %v1638_v18, %s1309_s5  ;;  %475 = vrot.lane.b32.xlu0 %v409_v57, %s1309_s5 }
 0x24f   :  { %477 = vrot.lane.b32.xlu1 %v1651_v22, %s1309_s5  ;;  %471 = vrot.lane.b32.xlu0 %v407_v3, %s1309_s5 }
 0x253   :  { %473 = vrot.lane.b32.xlu1 %v1660_v20, %s1309_s5 }
 0x2a9   :  { %v594_v21 = vpop.permute.xlu0 %593 }
 0x2aa   :  { %1213 = vmatprep.subr.bf16.mxu0 %v594_v21 }
 0x2ab   :  { %1214 = vmatpush3.bf16.msra.mxu0 %v594_v21 }
 0x2ad   :  { %v592_v23 = vpop.permute.xlu1 %591 }
 0x2ae   :  { %1215 = vmatprep.subr.bf16.mxu0 %v592_v23 }
 0x2af   :  { %1216 = vmatpush3.bf16.msra.mxu0 %v592_v23 }
 0x2b1   :  { %v590_v24 = vpop.permute.xlu0 %589 }
 0x2b2   :  { %1217 = vmatprep.subr.bf16.mxu0 %v590_v24 }
 0x2b3   :  { %1218 = vmatpush3.bf16.msra.mxu0 %v590_v24 }
 0x2b5   :  { %v588_v25 = vpop.permute.xlu1 %587  ;;  %v484_v16 = vpop.permute.xlu0 %483 }
 0x2b6   :  { %1219 = vmatprep.subr.bf16.mxu0 %v588_v25  ;;  %vm501_vm10 = vcmp.ge.f32.partialorder %v413_v2, %v484_v16 }
 0x2b7   :  { %1220 = vmatpush3.bf16.msra.mxu0 %v588_v25  ;;  %v1683_v28 = vsel %vm501_vm10, 1.0, %v1310_v36 }
 0x2b9   :  { %v486_v17 = vpop.permute.xlu1 %485  ;;  %v480_v31 = vpop.permute.xlu0 %479 }
 0x2ba   :  { %1222 = vmatmul.mubr.msk.bf16.vlgmr.msra.gmra.mxu0 %vm175_vm1, %v1666_v29  ;;  %vm499_vm11 = vcmp.ge.f32.partialorder %v411_v12, %v480_v31  ;;  %vm502_vm13 = vcmp.ge.f32.partialorder %v1625_v11, %v486_v17 }
 0x2bb   :  { %1225 = vmatprep.mubr.msk.bf16.mxu0 %vm175_vm1, %v1670_v26  ;;  %v1688_v40 = vsel %vm499_vm11, 1.0, %v1310_v36  ;;  %v1697_v55 = vsel %vm502_vm13, 1.0, %v1310_v36 }
 0x2bd   :  { %v482_v6 = vpop.permute.xlu1 %481  ;;  %v476_v33 = vpop.permute.xlu0 %475 }
 0x2be   :  { %vm497_vm12 = vcmp.ge.f32.partialorder %v409_v57, %v476_v33  ;;  %vm500_vm14 = vcmp.ge.f32.partialorder %v1638_v18, %v482_v6 }
 0x2bf   :  { %v1692_v44 = vsel %vm497_vm12, 1.0, %v1310_v36  ;;  %v1702_v8 = vsel %vm500_vm14, 1.0, %v1310_v36 }
 0x2c1   :  { %v478_v35 = vpop.permute.xlu1 %477  ;;  %v472_v7 = vpop.permute.xlu0 %471 }
 0x2c2   :  { %1226 = vmatmul.mubr.msk.bf16.gmra.mxu0 %vm175_vm1, %v1678_v30  ;;  %vm495_vm15 = vcmp.ge.f32.partialorder %v407_v3, %v472_v7  ;;  %vm498_vm2 = vcmp.ge.f32.partialorder %v1651_v22, %v478_v35 }
 0x2c3   :  { %v1705_v11 = vsel %vm495_vm15, 1.0, %v1310_v36  ;;  %v1710_v14 = vsel %vm498_vm2, 1.0, %v1310_v36 }
 0x2c5   :  { %v474_v2 = vpop.permute.xlu1 %473 }
 0x2c6   :  { %vm496_vm3 = vcmp.ge.f32.partialorder %v1660_v20, %v474_v2 }
 0x2c7   :  { %v1715_v15 = vsel %vm496_vm3, 1.0, %v1310_v36 }
 0x37a   :  { %v1223_v32 = vpop.f32.mrf.mxu0 }
 0x37b   :  { %v678_v53 = vmul.f32 %v1223_v32, %v1692_v44 }
 0x37c   :  { %v645_v10 = vpop.f32.mrf.mxu0 }
 0x37d   :  { %v686_v18 = vadd.f32 1.0, %v678_v53  ;;  %v676_v57 = vmul.f32 %v1705_v11, %v645_v10 }
 0x37e   :  { %v1224_v34 = vpop.f32.mrf.mxu0 }
 0x37f   :  { %v679_v19 = vmul.f32 %v1224_v34, %v1710_v14  ;;  %v684_v3 = vadd.f32 1.0, %v676_v57 }
 0x380   :  { %v648_v27 = vpop.f32.mrf.mxu0 }
 0x381   :  { %v687_v21 = vadd.f32 1.0, %v679_v19  ;;  %v677_v23 = vmul.f32 %v1715_v15, %v648_v27 }
 0x382   :  { %v1227_v5 = vpop.f32.mrf.mxu0 }
 0x383   :  { %v682_v39 = vmul.f32 %v1227_v5, %v1683_v28  ;;  %v685_v24 = vadd.f32 1.0, %v677_v23 }
 0x384   :  { %v661_v41 = vpop.f32.mrf.mxu0 }
 0x385   :  { %v690_v45 = vadd.f32 1.0, %v682_v39  ;;  %v680_v47 = vmul.f32 %v1688_v40, %v661_v41 }
 0x386   :  { %v1228_v59 = vpop.f32.mrf.mxu0 }
 0x387   :  { %1292 = vrsqrt.f32 %v690_v45  ;;  %v688_v61 = vadd.f32 1.0, %v680_v47  ;;  %v683_v62 = vmul.f32 %v1228_v59, %v1697_v55 }
 0x388   :  { %v664_v9 = vpop.f32.mrf.mxu0 }
 0x389   :  { %v691_v12 = vadd.f32 1.0, %v683_v62  ;;  %v681_v4 = vmul.f32 %v1702_v8, %v664_v9  ;;  %1294 = vrsqrt.f32 %v688_v61 }
 0x38b   :  { %1296 = vrsqrt.f32 %v691_v12  ;;  %v689_v22 = vadd.f32 1.0, %v681_v4 }
 0x38c   :  { %1298 = vrsqrt.f32 %v686_v18 }
 0x38d   :  { %1300 = vrsqrt.f32 %v689_v22 }
 0x38e   :  { %1302 = vrsqrt.f32 %v684_v3 }
 0x38f   :  { %1304 = vrsqrt.f32 %v687_v21 }
 0x390   :  { %1306 = vrsqrt.f32 %v685_v24 }
 0x394   :  { %v1718_v25 = vpop.eup %1292 }
 0x395   :  { %720 = vrot.lane.b32.xlu0 %v1718_v25, %s1308_s4 }
 0x396   :  { %v1722_v20 = vpop.eup %1294 }
 0x398   :  { %v1724_v16 = vpop.eup %1296 }
 0x399   :  { %722 = vrot.lane.b32.xlu1 %v1724_v16, %s1308_s4  ;;  %716 = vrot.lane.b32.xlu0 %v1722_v20, %s1308_s4  ;;  %v1730_v36 = vpop.eup %1298 }
 0x39a   :  { %v1732_v17 = vpop.eup %1300 }
 0x39b   :  { %v1738_v31 = vpop.eup %1302 }
 0x39c   :  { %v1740_v32 = vpop.eup %1304 }
 0x39d   :  { %718 = vrot.lane.b32.xlu1 %v1732_v17, %s1308_s4  ;;  %712 = vrot.lane.b32.xlu0 %v1730_v36, %s1308_s4  ;;  %v1746_v6 = vpop.eup %1306 }
 0x3a1   :  { %714 = vrot.lane.b32.xlu1 %v1740_v32, %s1308_s4  ;;  %708 = vrot.lane.b32.xlu0 %v1738_v31, %s1308_s4 }
 0x3a5   :  { %710 = vrot.lane.b32.xlu1 %v1746_v6, %s1308_s4 }
 0x407   :  { %v721_v10 = vpop.permute.xlu0 %720 }
 0x408   :  { %v738_v33 = vmul.f32 %v1585_v38, %v721_v10 }
 0x40a   :  { %772 = vperm.xlu0 %1252, %v738_v33   ;;  %v961_v33 = vmul.f32 %v1738_v31, %v1738_v31 }
 0x40b   :  { %v723_v34 = vpop.permute.xlu1 %722  ;;  %v717_v27 = vpop.permute.xlu0 %716 }
 0x40c   :  { %v739_v35 = vmul.f32 %v1582_v37, %v723_v34  ;;  %v736_v39 = vmul.f32 %v1593_v43, %v717_v27  ;;  %v1313_v43 = vmov 0   ;;  %v963_v34 = vmul.f32 %v1730_v36, %v1730_v36 }
 0x40d   :  { %v962_v27 = vmul.f32 %v1746_v6, %v1746_v6 }
 0x40e   :  { %777 = vperm.xlu1 %1253, %v739_v35   ;;  %v964_v35 = vmul.f32 %v1740_v32, %v1740_v32 }
 0x40f   :  { %v719_v5 = vpop.permute.xlu1 %718  ;;  %v713_v7 = vpop.permute.xlu0 %712 }
 0x410   :  { %v737_v41 = vmul.f32 %v1590_v42, %v719_v5  ;;  %v734_v47 = vmul.f32 %v1601_v52, %v713_v7  ;;  %v965_v5 = vmul.f32 %v1722_v20, %v1722_v20  ;;  %v966_v7 = vmul.f32 %v1732_v17, %v1732_v17 }
 0x412   :  { %767 = vperm.xlu0 %1252, %v737_v41   ;;  %762 = vperm.xlu1 %1253, %v736_v39   ;;  %v967_v39 = vmul.f32 %v1718_v25, %v1718_v25  ;;  %v1256_v41 = vpack.i.bf16 %v1715_v15, %v1705_v11 }
 0x413   :  { %v715_v45 = vpop.permute.xlu1 %714  ;;  %v709_v38 = vpop.permute.xlu0 %708 }
 0x414   :  { %v735_v53 = vmul.f32 %v1598_v49, %v715_v45  ;;  %v732_v37 = vmul.f32 %v1612_v1, %v709_v38  ;;  %v968_v45 = vmul.f32 %v1724_v16, %v1724_v16  ;;  %v1271_v38 = vpack.i.bf16 %v1697_v55, %v1683_v28 }
 0x416   :  { %757 = vperm.xlu0 %1252, %v735_v53   ;;  %752 = vperm.xlu1 %1253, %v734_v47   ;;  %v1261_v47 = vpack.i.bf16 %v1710_v14, %v1692_v44  ;;  %v1266_v53 = vpack.i.bf16 %v1702_v8, %v1688_v40 }
 0x417   :  { %v711_v59 = vpop.permute.xlu1 %710 }
 0x418   :  { %v733_v61 = vmul.f32 %v1609_v0, %v711_v59 }
 0x41a   :  { %747 = vperm.xlu0 %1252, %v733_v61   ;;  %742 = vperm.xlu1 %1253, %v732_v37  }
 0x41e   :  { %1254 = vset.pattern.permute.xlu1 %v1313_v43  ;;  %1255 = vset.pattern.permute.xlu0 %v1313_v43 }
 0x485   :  { %v773_v42 = vpop.permute.xlu0 %772 }
 0x486   :  { %v786_v2 = vmul.f32 %v773_v42, %v1502_v63 }
 0x489   :  { %v778_v62 = vpop.permute.xlu1 %777 }
 0x48a   :  { %v787_v52 = vmul.f32 %v1497_v60, %v778_v62 }
 0x48c   :  { %v791_v49 = vpack.c.bf16 %v787_v52, %v786_v2 }
 0x48d   :  { %v763_v9 = vpop.permute.xlu1 %762  ;;  %v768_v12 = vpop.permute.xlu0 %767 }
 0x48e   :  { %v784_v4 = vmul.f32 %v763_v9, %v1495_v58  ;;  %v785_v1 = vmul.f32 %v1493_v56, %v768_v12  ;;  %802 = vrot.lane.b32.xlu1 %v791_v49, %s1314_s2 }
 0x490   :  { %v790_v0 = vpack.c.bf16 %v785_v1, %v784_v4 }
 0x491   :  { %v753_v13 = vpop.permute.xlu1 %752  ;;  %v758_v18 = vpop.permute.xlu0 %757 }
 0x492   :  { %v782_v57 = vmul.f32 %v753_v13, %v1491_v54  ;;  %v783_v19 = vmul.f32 %v1489_v51, %v758_v18  ;;  %800 = vrot.lane.b32.xlu0 %v790_v0, %s1314_s2 }
 0x494   :  { %v789_v22 = vpack.c.bf16 %v783_v19, %v782_v57 }
 0x495   :  { %v743_v3 = vpop.permute.xlu1 %742  ;;  %v748_v21 = vpop.permute.xlu0 %747 }
 0x496   :  { %v780_v23 = vmul.f32 %v743_v3, %v1487_v48  ;;  %v781_v24 = vmul.f32 %v1485_v46, %v748_v21  ;;  %798 = vrot.lane.b32.xlu1 %v789_v22, %s1314_s2 }
 0x498   :  { %v788_v10 = vpack.c.bf16 %v781_v24, %v780_v23 }
 0x49a   :  { %971 = vperm.xlu1 %1254, %v961_v33   ;;  %796 = vrot.lane.b32.xlu0 %v788_v10, %s1314_s2 }
 0x49e   :  { %981 = vperm.xlu1 %1254, %v963_v34   ;;  %976 = vperm.xlu0 %1255, %v962_v27  }
 0x4a2   :  { %986 = vperm.xlu1 %1254, %v964_v35   ;;  %991 = vperm.xlu0 %1255, %v965_v5  }
 0x4a6   :  { %996 = vperm.xlu1 %1254, %v966_v7   ;;  %1001 = vperm.xlu0 %1255, %v967_v39  }
 0x4aa   :  { %1006 = vperm.xlu1 %1254, %v968_v45   ;;  %1257 = vperm.xlu0 %1255, %v1256_v41  }
 0x4ae   :  { %1262 = vperm.xlu1 %1254, %v1261_v47   ;;  %1267 = vperm.xlu0 %1255, %v1266_v53  }
 0x4b2   :  { %1272 = vperm.xlu1 %1254, %v1271_v38   ;;  %922 = vperm.xlu0 %1255, %v1738_v31  }
 0x4b6   :  { %926 = vperm.xlu1 %1254, %v1746_v6   ;;  %930 = vperm.xlu0 %1255, %v1730_v36  }
 0x4ba   :  { %934 = vperm.xlu1 %1254, %v1740_v32   ;;  %938 = vperm.xlu0 %1255, %v1722_v20  }
 0x4be   :  { %942 = vperm.xlu1 %1254, %v1732_v17   ;;  %946 = vperm.xlu0 %1255, %v1718_v25  }
 0x4c2   :  { %950 = vperm.xlu1 %1254, %v1724_v16  }
 0x500   :  { %v803_v40 = vpop.permute.xlu1 %802 }
 0x501   :  { %1229 = vmatprep.subr.bf16.mxu1 %v803_v40 }
 0x502   :  { %1230 = vmatpush3.bf16.msra.mxu1 %v803_v40 }
 0x504   :  { %v801_v28 = vpop.permute.xlu0 %800 }
 0x505   :  { %1231 = vmatprep.subr.bf16.mxu1 %v801_v28 }
 0x506   :  { %1232 = vmatpush3.bf16.msra.mxu1 %v801_v28 }
 0x508   :  { %v799_v44 = vpop.permute.xlu1 %798 }
 0x509   :  { %1233 = vmatprep.subr.bf16.mxu1 %v799_v44 }
 0x50a   :  { %1234 = vmatpush3.bf16.msra.mxu1 %v799_v44 }
 0x50c   :  { %v797_v55 = vpop.permute.xlu0 %796 }
 0x50d   :  { %1235 = vmatprep.subr.bf16.mxu1 %v797_v55 }
 0x50e   :  { %1236 = vmatpush3.bf16.msra.mxu1 %v797_v55 }
 0x511   :  { %1238 = vmatmul.mubr.msk.bf16.vlgmr.msra.gmra.mxu1 %vm175_vm1, %v1666_v29 }
 0x512   :  { %1241 = vmatprep.mubr.msk.bf16.mxu1 %vm175_vm1, %v1670_v26 }
 0x515   :  { %v972_v8 = vpop.permute.xlu1 %971 }
 0x516   :  { %v1009_v11 = vmul.f32 %v972_v8, %v1487_v48 }
 0x518   :  { %1025 = vrot.lane.b32.xlu0 %v1009_v11, %s1314_s2 }
 0x519   :  { %v982_v14 = vpop.permute.xlu1 %981  ;;  %1242 = vmatmul.mubr.msk.bf16.gmra.mxu1 %vm175_vm1, %v1678_v30  ;;  %v977_v15 = vpop.permute.xlu0 %976 }
 0x51a   :  { %v1011_v25 = vmul.f32 %v982_v14, %v1491_v54  ;;  %v1010_v20 = vmul.f32 %v1485_v46, %v977_v15 }
 0x51c   :  { %1029 = vrot.lane.b32.xlu0 %v1011_v25, %s1314_s2  ;;  %1027 = vrot.lane.b32.xlu1 %v1010_v20, %s1314_s2 }
 0x51d   :  { %v987_v29 = vpop.permute.xlu1 %986  ;;  %v992_v26 = vpop.permute.xlu0 %991 }
 0x51e   :  { %v1012_v16 = vmul.f32 %v1489_v51, %v987_v29  ;;  %v1013_v48 = vmul.f32 %v992_v26, %v1495_v58 }
 0x520   :  { %1031 = vrot.lane.b32.xlu1 %v1012_v16, %s1314_s2  ;;  %1033 = vrot.lane.b32.xlu0 %v1013_v48, %s1314_s2 }
 0x521   :  { %v997_v30 = vpop.permute.xlu1 %996  ;;  %v1002_v36 = vpop.permute.xlu0 %1001 }
 0x522   :  { %v1014_v54 = vmul.f32 %v1493_v56, %v997_v30  ;;  %v1015_v46 = vmul.f32 %v1002_v36, %v1502_v63 }
 0x524   :  { %1035 = vrot.lane.b32.xlu1 %v1014_v54, %s1314_s2  ;;  %1037 = vrot.lane.b32.xlu0 %v1015_v46, %s1314_s2 }
 0x525   :  { %v1007_v17 = vpop.permute.xlu1 %1006  ;;  %v1258_v51 = vpop.permute.xlu0 %1257 }
 0x526   :  { %v1016_v31 = vmul.f32 %v1497_v60, %v1007_v17  ;;  %v1259_v4 = vunpack.i.l.bf16 %v1258_v51  ;;  %v1260_v21 = vunpack.i.h.bf16 %v1258_v51 }
 0x528   :  { %1039 = vrot.lane.b32.xlu1 %v1016_v31, %s1314_s2  ;;  %1057 = vrot.lane.b32.xlu0 %v1538_v50, %s1314_s2 }
 0x529   :  { %v1826_v58 = vpop.permute.xlu0 %1267  ;;  %v1263_v6 = vpop.permute.xlu1 %1262 }
 0x52a   :  { %v1264_v9 = vunpack.i.l.bf16 %v1263_v6  ;;  %v1265_v13 = vunpack.i.h.bf16 %v1263_v6  ;;  %v1269_v39 = vunpack.i.l.bf16 %v1826_v58  ;;  %v1270_v15 = vunpack.i.h.bf16 %v1826_v58 }
 0x52d   :  { %v923_v32 = vpop.permute.xlu0 %922  ;;  %v1273_v59 = vpop.permute.xlu1 %1272 }
 0x52e   :  { %v1274_v33 = vunpack.i.l.bf16 %v1273_v59  ;;  %v1275_v40 = vunpack.i.h.bf16 %v1273_v59 }
 0x531   :  { %v931_v56 = vpop.permute.xlu0 %930  ;;  %v927_v37 = vpop.permute.xlu1 %926 }
 0x535   :  { %v939_v63 = vpop.permute.xlu0 %938  ;;  %v935_v43 = vpop.permute.xlu1 %934 }
 0x539   :  { %v947_v61 = vpop.permute.xlu0 %946  ;;  %v943_v62 = vpop.permute.xlu1 %942 }
 0x53d   :  { %v951_v60 = vpop.permute.xlu1 %950 }
 0x58a   :  { %v1026_v42 = vpop.permute.xlu0 %1025 }
 0x58e   :  { %v1030_v2 = vpop.permute.xlu0 %1029  ;;  %v1028_v49 = vpop.permute.xlu1 %1027 }
 0x592   :  { %v1034_v52 = vpop.permute.xlu0 %1033  ;;  %v1032_v18 = vpop.permute.xlu1 %1031 }
 0x596   :  { %v1038_v12 = vpop.permute.xlu0 %1037  ;;  %v1036_v28 = vpop.permute.xlu1 %1035 }
 0x59a   :  { %v1058_v3 = vpop.permute.xlu0 %1057  ;;  %v1040_v17 = vpop.permute.xlu1 %1039 }
 0x5d1   :  { %v1239_v50 = vpop.f32.mrf.mxu1 }
 0x5d2   :  { %v915_v1 = vmul.f32 %v1264_v9, %v1239_v50 }
 0x5d3   :  { %v842_v0 = vpop.f32.mrf.mxu1 }
 0x5d4   :  { %v955_v57 = vmul.f32 %v931_v56, %v915_v1  ;;  %v913_v19 = vmul.f32 %v1259_v4, %v842_v0 }
 0x5d5   :  { %v1240_v22 = vpop.f32.mrf.mxu1 }
 0x5d6   :  { %v1051_v23 = vadd.f32 %v1030_v2, %v955_v57  ;;  %v953_v24 = vmul.f32 %v923_v32, %v913_v19  ;;  %v916_v10 = vmul.f32 %v1265_v13, %v1240_v22 }
 0x5d7   :  { %v845_v34 = vpop.f32.mrf.mxu1 }
 0x5d8   :  { %v1049_v27 = vadd.f32 %v1026_v42, %v953_v24  ;;  %v956_v35 = vmul.f32 %v935_v43, %v916_v10  ;;  %v914_v5 = vmul.f32 %v1260_v21, %v845_v34  ;;  %v1062_v7 = vadd.f32 %v1058_v3, %v1051_v23 }
 0x5d9   :  { %v1243_v41 = vpop.f32.mrf.mxu1 }
 0x5da   :  { %v1052_v45 = vadd.f32 %v1032_v18, %v956_v35  ;;  %v954_v47 = vmul.f32 %v927_v37, %v914_v5  ;;  %v1060_v53 = vadd.f32 %v1058_v3, %v1049_v27  ;;  %1070 = vst.msk [vmem:[%s1868_s6 + $0x10] sm:$0xff] %vm45_vm0, %v1062_v7  ;;  %v919_v38 = vmul.f32 %v1274_v33, %v1243_v41 }
 0x5db   :  { %v858_v44 = vpop.f32.mrf.mxu1 }
 0x5dc   :  { %v1050_v55 = vadd.f32 %v1028_v49, %v954_v47  ;;  %v1063_v8 = vadd.f32 %v1058_v3, %v1052_v45  ;;  %1068 = vst.msk [vmem:[%s1868_s6] sm:$0xff] %vm45_vm0, %v1060_v53  ;;  %v959_v11 = vmul.f32 %v947_v61, %v919_v38  ;;  %v917_v14 = vmul.f32 %v1269_v39, %v858_v44 }
 0x5dd   :  { %v1244_v25 = vpop.f32.mrf.mxu1 }
 0x5de   :  { %v1061_v20 = vadd.f32 %v1058_v3, %v1050_v55  ;;  %1071 = vst.msk [vmem:[%s1868_s6 + $0x18] sm:$0xff] %vm45_vm0, %v1063_v8  ;;  %v1055_v29 = vadd.f32 %v1038_v12, %v959_v11  ;;  %v957_v26 = vmul.f32 %v939_v63, %v917_v14  ;;  %v920_v16 = vmul.f32 %v1275_v40, %v1244_v25 }
 0x5df   :  { %v861_v48 = vpop.f32.mrf.mxu1 }
 0x5e0   :  { %1069 = vst.msk [vmem:[%s1868_s6 + $0x8] sm:$0xff] %vm45_vm0, %v1061_v20  ;;  %v1066_v30 = vadd.f32 %v1058_v3, %v1055_v29  ;;  %v1053_v36 = vadd.f32 %v1034_v52, %v957_v26  ;;  %v960_v54 = vmul.f32 %v951_v60, %v920_v16  ;;  %v918_v46 = vmul.f32 %v1270_v15, %v861_v48 }
 0x5e2   :  { %1074 = vst.msk [vmem:[%s1868_s6 + $0x30] sm:$0xff] %vm45_vm0, %v1066_v30  ;;  %v1064_v31 = vadd.f32 %v1058_v3, %v1053_v36  ;;  %v1056_v51 = vadd.f32 %v1040_v17, %v960_v54  ;;  %v958_v58 = vmul.f32 %v943_v62, %v918_v46 }
 0x5e4   :  { %1072 = vst.msk [vmem:[%s1868_s6 + $0x20] sm:$0xff] %vm45_vm0, %v1064_v31  ;;  %v1067_v32 = vadd.f32 %v1058_v3, %v1056_v51  ;;  %v1054_v6 = vadd.f32 %v1036_v28, %v958_v58 }
 0x5e6   :  { %1075 = vst.msk [vmem:[%s1868_s6 + $0x38] sm:$0xff] %vm45_vm0, %v1067_v32  ;;  %v1065_v56 = vadd.f32 %v1058_v3, %v1054_v6 }
 0x5e8   :  { %1073 = vst.msk [vmem:[%s1868_s6 + $0x28] sm:$0xff] %vm45_vm0, %v1065_v56 }

</bundles_post_ra>
